<compile_context>
chip_gen: v6e
topology: v6e:2x2x1
jax: 0.10.0
libtpu: 0.0.40
codegen_flags: <defaults>
</compile_context>

<pallas_src>
import functools
import math

import jax
import jax.numpy as jnp
from jax.experimental import pallas as pl
from jax.experimental.pallas import tpu as pltpu


def _channel_attention_kernel(w1_ref, b1_ref, w2_ref, b2_ref, x_ref, out_ref,
                              *, inv_hw):
    # x block: (BN, C, HW) -- HW on the 128-lane axis, C on the sublane axis.
    x = x_ref[...]
    xf = x.astype(jnp.float32)

    # Global average pool over spatial -> (BN, C).
    pooled = jnp.sum(xf, axis=-1) * inv_hw

    # Conv2d(C, C//r, 1x1) + ReLU  == pooled @ w1.T + b1 on the pooled vectors.
    hidden = jnp.dot(pooled, w1_ref[...], preferred_element_type=jnp.float32)
    hidden = jnp.maximum(hidden + b1_ref[...], 0.0)              # (BN, C_red)

    # Conv2d(C//r, C, 1x1) + Sigmoid -> per-(batch, channel) gate.
    logits = jnp.dot(hidden, w2_ref[...], preferred_element_type=jnp.float32)
    logits = logits + b2_ref[...]
    gate = 1.0 / (1.0 + jnp.exp(-logits))                        # (BN, C)

    # Re-weight: broadcast the gate over the lane-dense spatial axis.
    out_ref[...] = (xf * gate[:, :, None]).astype(out_ref.dtype)


def _pick_batch_block(n, c, hw, dtype_bytes, budget_bytes=4 << 20):
    """Largest divisor of n whose (bn, c, hw) block stays under budget."""
    per_batch = max(c * hw * dtype_bytes, 1)
    bn = max(1, min(n, budget_bytes // per_batch))
    while n % bn:
        bn -= 1
    return bn


def channel_attention(x_nchw, params):
    """Forward of _ChannelAttentionLayer. x_nchw: (N, C, H, W)."""
    n, c, h, w = x_nchw.shape
    c_red = params["w1"].shape[0]
    hw = h * w

    # Flatten spatial: NCHW -> (N, C, H*W). Keeps channel-major order (no
    # transpose) and puts the large spatial extent on the lane axis.
    x_flat = x_nchw.reshape(n, c, hw)

    # 1x1 conv weights (O, I, 1, 1) -> transposed to (I, O) so the kernel does a
    # straight (BN, I) @ (I, O) matmul; biases -> (1, O) row vectors.
    w1t = params["w1"].reshape(c_red, c).T.astype(jnp.float32)   # (C, C_red)
    b1 = params["b1"].reshape(1, c_red).astype(jnp.float32)
    w2t = params["w2"].reshape(c, c_red).T.astype(jnp.float32)   # (C_red, C)
    b2 = params["b2"].reshape(1, c).astype(jnp.float32)

    bn = _pick_batch_block(n, c, hw, x_flat.dtype.itemsize)
    grid = (n // bn,)

    kernel = functools.partial(_channel_attention_kernel, inv_hw=1.0 / hw)

    out_flat = pl.pallas_call(
        kernel,
        out_shape=jax.ShapeDtypeStruct((n, c, hw), x_flat.dtype),
        grid=grid,
        in_specs=[
            pl.BlockSpec((c, c_red), lambda i: (0, 0)),        # w1^T (resident)
            pl.BlockSpec((1, c_red), lambda i: (0, 0)),        # b1
            pl.BlockSpec((c_red, c), lambda i: (0, 0)),        # w2^T
            pl.BlockSpec((1, c), lambda i: (0, 0)),            # b2
            pl.BlockSpec((bn, c, hw), lambda i: (i, 0, 0)),    # x (batch tile)
        ],
        out_specs=pl.BlockSpec((bn, c, hw), lambda i: (i, 0, 0)),
        compiler_params=pltpu.CompilerParams(
            dimension_semantics=("parallel",),
            vmem_limit_bytes=64 << 20),
    )(w1t, b1, w2t, b2, x_flat)

    return out_flat.reshape(n, c, h, w)


def _reference(x, params):
    """Pure-JAX NCHW reference matching the PyTorch forward."""
    n, c, h, w = x.shape
    c_red = params["w1"].shape[0]
    w1 = params["w1"].reshape(c_red, c)
    w2 = params["w2"].reshape(c, c_red)
    pooled = jnp.mean(x, axis=(2, 3))                               # (N, C)
    hid = jnp.maximum(pooled @ w1.T + params["b1"], 0.0)            # (N, C_red)
    logits = hid @ w2.T + params["b2"]                              # (N, C)
    gate = 1.0 / (1.0 + jnp.exp(-logits))
    return x * gate[:, :, None, None]


if __name__ == "__main__":
    key = jax.random.PRNGKey(0)
    N, C, H, W = 2, 4, 16, 16
    REDUCTION = 2
    C_RED = C // REDUCTION

    ks = jax.random.split(key, 5)
    # PyTorch Conv2d default init bounds: 1/sqrt(fan_in), fan_in = in_ch * 1 * 1
    b1_bound = 1.0 / math.sqrt(C)
    b2_bound = 1.0 / math.sqrt(C_RED)
    params = {
        "w1": jax.random.uniform(ks[0], (C_RED, C, 1, 1), jnp.float32,
                                 -b1_bound, b1_bound),
        "b1": jax.random.uniform(ks[1], (C_RED,), jnp.float32,
                                 -b1_bound, b1_bound),
        "w2": jax.random.uniform(ks[2], (C, C_RED, 1, 1), jnp.float32,
                                 -b2_bound, b2_bound),
        "b2": jax.random.uniform(ks[3], (C,), jnp.float32,
                                 -b2_bound, b2_bound),
    }
    x = jax.random.normal(ks[4], (N, C, H, W), jnp.float32)

    out = channel_attention(x, params)
    out = jax.block_until_ready(out)

    ref = _reference(x, params)
    assert out.shape == ref.shape == (N, C, H, W)
    max_err = float(jnp.max(jnp.abs(out - ref)))
    assert jnp.allclose(out, ref, rtol=1e-5, atol=1e-5), max_err
    print("KERNEL_OK")
</pallas_src>

<mosaic_0001>
module attributes {stable_mosaic.version = 11 : i64} {
  func.func @_channel_attention_kernel(%arg0: i32, %arg1: memref<4x2xf32, #tpu.memory_space<vmem>>, %arg2: memref<1x2xf32, #tpu.memory_space<vmem>>, %arg3: memref<2x4xf32, #tpu.memory_space<vmem>>, %arg4: memref<1x4xf32, #tpu.memory_space<vmem>>, %arg5: memref<2x4x256xf32, #tpu.memory_space<vmem>>, %arg6: memref<2x4x256xf32, #tpu.memory_space<vmem>>) attributes {dimension_semantics = [#tpu.dimension_semantics<parallel>], iteration_bounds = array<i64: 1>, scalar_prefetch = 0 : i64, scratch_operands = 0 : i64, tpu.core_type = #tpu.core_type<tc>, window_params = [{pipeline_mode = #tpu.pipeline_mode<synchronous>, transform_indices = @transform_0, window_bounds = array<i64: 4, 2>}, {pipeline_mode = #tpu.pipeline_mode<synchronous>, transform_indices = @transform_1, window_bounds = array<i64: 1, 2>}, {pipeline_mode = #tpu.pipeline_mode<synchronous>, transform_indices = @transform_2, window_bounds = array<i64: 2, 4>}, {pipeline_mode = #tpu.pipeline_mode<synchronous>, transform_indices = @transform_3, window_bounds = array<i64: 1, 4>}, {transform_indices = @transform_4, window_bounds = array<i64: 2, 4, 256>}, {transform_indices = @transform_5, window_bounds = array<i64: 2, 4, 256>}]} {
    %c0 = arith.constant 0 : index
    %c0_0 = arith.constant 0 : index
    %c0_1 = arith.constant 0 : index
    %0 = vector.load %arg5[%c0, %c0_0, %c0_1] : memref<2x4x256xf32, #tpu.memory_space<vmem>>, vector<2x4x256xf32>
    %cst = arith.constant dense<0.000000e+00> : vector<2x4xf32>
    %1 = vector.multi_reduction <add>, %0, %cst [2] : vector<2x4x256xf32> to vector<2x4xf32>
    %cst_2 = arith.constant 3.906250e-03 : f32
    %2 = vector.broadcast %cst_2 : f32 to vector<2x4xf32>
    %3 = arith.mulf %1, %2 : vector<2x4xf32>
    %c0_3 = arith.constant 0 : index
    %c0_4 = arith.constant 0 : index
    %4 = vector.load %arg1[%c0_3, %c0_4] : memref<4x2xf32, #tpu.memory_space<vmem>>, vector<4x2xf32>
    %cst_5 = arith.constant dense<0.000000e+00> : vector<2x2xf32>
    %5 = tpu.matmul %3, %4, %cst_5 {dimension_numbers = #tpu.dot_dimension_numbers<[1], [0], [0], [1], [0, 0, 1, 1], [], []>} : vector<2x4xf32>, vector<4x2xf32>, vector<2x2xf32> -> vector<2x2xf32>
    %c0_6 = arith.constant 0 : index
    %c0_7 = arith.constant 0 : index
    %6 = vector.load %arg2[%c0_6, %c0_7] : memref<1x2xf32, #tpu.memory_space<vmem>>, vector<1x2xf32>
    %7 = vector.broadcast %6 : vector<1x2xf32> to vector<2x2xf32>
    %8 = arith.addf %5, %7 : vector<2x2xf32>
    %cst_8 = arith.constant 0.000000e+00 : f32
    %9 = vector.broadcast %cst_8 : f32 to vector<2x2xf32>
    %10 = arith.maximumf %8, %9 : vector<2x2xf32>
    %c0_9 = arith.constant 0 : index
    %c0_10 = arith.constant 0 : index
    %11 = vector.load %arg3[%c0_9, %c0_10] : memref<2x4xf32, #tpu.memory_space<vmem>>, vector<2x4xf32>
    %cst_11 = arith.constant dense<0.000000e+00> : vector<2x4xf32>
    %12 = tpu.matmul %10, %11, %cst_11 {dimension_numbers = #tpu.dot_dimension_numbers<[1], [0], [0], [1], [0, 0, 1, 1], [], []>} : vector<2x2xf32>, vector<2x4xf32>, vector<2x4xf32> -> vector<2x4xf32>
    %c0_12 = arith.constant 0 : index
    %c0_13 = arith.constant 0 : index
    %13 = vector.load %arg4[%c0_12, %c0_13] : memref<1x4xf32, #tpu.memory_space<vmem>>, vector<1x4xf32>
    %14 = vector.broadcast %13 : vector<1x4xf32> to vector<2x4xf32>
    %15 = arith.addf %12, %14 : vector<2x4xf32>
    %cst_14 = arith.constant 0.000000e+00 : f32
    %16 = vector.broadcast %cst_14 : f32 to vector<2x4xf32>
    %17 = arith.subf %16, %15 : vector<2x4xf32>
    %18 = math.exp %17 : vector<2x4xf32>
    %cst_15 = arith.constant 1.000000e+00 : f32
    %19 = vector.broadcast %cst_15 : f32 to vector<2x4xf32>
    %20 = arith.addf %19, %18 : vector<2x4xf32>
    %cst_16 = arith.constant 1.000000e+00 : f32
    %21 = vector.broadcast %cst_16 : f32 to vector<2x4xf32>
    %22 = arith.divf %21, %20 : vector<2x4xf32>
    %23 = vector.shape_cast %22 : vector<2x4xf32> to vector<2x4x1xf32>
    %24 = vector.broadcast %23 : vector<2x4x1xf32> to vector<2x4x256xf32>
    %25 = arith.mulf %0, %24 : vector<2x4x256xf32>
    %c0_17 = arith.constant 0 : index
    %c0_18 = arith.constant 0 : index
    %c0_19 = arith.constant 0 : index
    %26 = vector.load %arg6[%c0_17, %c0_18, %c0_19] : memref<2x4x256xf32, #tpu.memory_space<vmem>>, vector<2x4x256xf32>
    tpu.vector_store %arg6[%c0_17, %c0_18, %c0_19], %25 {strides = array<i32>} : memref<2x4x256xf32, #tpu.memory_space<vmem>>, vector<2x4x256xf32>,
    return
  }
  func.func @transform_0(%arg0: i32) -> (i32, i32) {
    %c0_i32 = arith.constant 0 : i32
    %c0_i32_0 = arith.constant 0 : i32
    %c0_i32_1 = arith.constant 0 : i32
    return %c0_i32, %c0_i32_0 : i32, i32
  }
  func.func @transform_1(%arg0: i32) -> (i32, i32) {
    %c0_i32 = arith.constant 0 : i32
    %c0_i32_0 = arith.constant 0 : i32
    %c0_i32_1 = arith.constant 0 : i32
    return %c0_i32, %c0_i32_0 : i32, i32
  }
  func.func @transform_2(%arg0: i32) -> (i32, i32) {
    %c0_i32 = arith.constant 0 : i32
    %c0_i32_0 = arith.constant 0 : i32
    %c0_i32_1 = arith.constant 0 : i32
    return %c0_i32, %c0_i32_0 : i32, i32
  }
  func.func @transform_3(%arg0: i32) -> (i32, i32) {
    %c0_i32 = arith.constant 0 : i32
    %c0_i32_0 = arith.constant 0 : i32
    %c0_i32_1 = arith.constant 0 : i32
    return %c0_i32, %c0_i32_0 : i32, i32
  }
  func.func @transform_4(%arg0: i32) -> (i32, i32, i32) {
    %c0_i32 = arith.constant 0 : i32
    %c0_i32_0 = arith.constant 0 : i32
    %c0_i32_1 = arith.constant 0 : i32
    return %arg0, %c0_i32, %c0_i32_0 : i32, i32, i32
  }
  func.func @transform_5(%arg0: i32) -> (i32, i32, i32) {
    %c0_i32 = arith.constant 0 : i32
    %c0_i32_0 = arith.constant 0 : i32
    %c0_i32_1 = arith.constant 0 : i32
    return %arg0, %c0_i32, %c0_i32_0 : i32, i32, i32
  }
}

</mosaic_0001>

<bundles_post_ra>
// kernel: tpu_custom_call.1
= control target key start
LH: loop header
LB: loop body
LE: loop exit
PB: predicated region body
PF: predicated region fallthrough
CT: control target
= control target key end

     0   :  { %10 = vsyncpa [#allocation3], 0  ;;  %s455_s0 = inlined_call_operand.vmem [shape: f32[4,2], index: 0, kind: input, shape index: {}]   ;;  %s456_s1 = inlined_call_operand.vmem [shape: f32[1,2], index: 1, kind: input, shape index: {}]   ;;  %s457_s2 = inlined_call_operand.vmem [shape: f32[2,4], index: 2, kind: input, shape index: {}]   ;;  %s458_s3 = inlined_call_operand.vmem [shape: f32[1,4], index: 3, kind: input, shape index: {}]   ;;  %s459_s4 = inlined_call_operand.hbm [shape: f32[2,4,256], index: 4, kind: input, shape index: {}]   ;;  %s460_s5 = inlined_call_operand.hbm [shape: f32[2,4,256], index: 5, kind: output, shape index: {}]  }
   0x1   :  { %11 = vsyncpa [#allocation4], 0  ;;  %s377_s18 = smov [#allocation2]  }
   0x2   :  { %s25_s19 = sshll.u32 %s377_s18, 4  ;;  %s26_s19 = int_to_ptr.vmem [resolvable:$true] %s25_s19 }
   0x3   :  { %s341_s20 = scalar_lea.vmem %s26_s19, 256  ;;  %p346_p1 = scmp.lt.s32.totalorder %s26_s19, %s26_s19 }
   0x4   :  { %p342_p0 = scmp.ne.s32.totalorder %s26_s19, %s341_s20  ;;  %p347_p2 = scmp.lt.s32.totalorder %s341_s20, %s341_s20 }
   0x6   :  { %p348_p3 = por %p347_p2, %p346_p1 }
   0x8   :  { %p349_p4 = pnand %p348_p3, %p342_p0 }
   0xa   :  { %352 = shalt.err (!%p349_p4)
}
   0xb   :  { %s378_s21 = smov 128   ;;  %s379_s22 = smov 8  }
   0xc   :  { %31 = dma.hbm_to_vmem [thread:$0]  %s459_s4, 256, %s26_s19, [#allocation3], %s378_s21, %s378_s21, %s379_s22  }
   0xd   :  { %373 = dma.done.wait [#allocation3], 256  }
   0xe   :  { %374 = vsyncadd [#allocation3], 4294967040  ;;  %vm43_vm0 = vcmask 1043456   ;;  %v420_v0 = vld [vmem:[#allocation2] sm:$0xff]  ;;  %v422_v1 = vld [vmem:[#allocation2 + $0x8] sm:$0xff]  ;;  %v380_v11 = vmov 0.0   ;;  %v66_v12 = vlaneseq }
   0xf   :  { %v39_v2 = vcombine.high %v420_v0, %v420_v0  ;;  %v44_v3 = vsel %vm43_vm0, %v420_v0, 0.0  ;;  %v40_v4 = vcombine.high %v422_v1, %v422_v1  ;;  %v49_v6 = vsel %vm43_vm0, %v422_v1, 0.0  ;;  %v56_v10 = vld [vmem:[%s455_s0] sm:$0xf]  ;;  %310 = vmatprep.subr.mxu0 %v380_v11  ;;  %315 = vmatprep.subr.mxu1 %v380_v11 }
  0x10   :  { %vm381_vm1 = vmmov 0   ;;  %311 = vmatpush3.msk.msra.mxu0 %vm43_vm0, %v56_v10  ;;  %v67_v13 = vand.u32 127, %v66_v12  ;;  %v69_v14 = vshrl.u32 %v66_v12, 7  ;;  %vm76_vm2 = vcmask 1041409   ;;  %v155_v23 = vld [vmem:[%s457_s2] sm:$0x3] }
  0x11   :  { %v45_v5 = vsel %vm43_vm0, %v39_v2, 0.0  ;;  %v50_v7 = vsel %vm43_vm0, %v40_v4, 0.0  ;;  %312 = vmatprep.mubr.msk.f32.mxu0 %vm381_vm1, %v380_v11  ;;  %317 = vmatprep.mubr.msk.f32.mxu1 %vm381_vm1, %v380_v11  ;;  %vm78_vm3 = vcmask 31744   ;;  %vm167_vm4 = vcmask 1041408   ;;  %v300_v24 = vld [vmem:[%s456_s1] ss:$0 sm:$0xff] }
  0x12   :  { %v46_v8 = vadd.f32 %v45_v5, %v44_v3  ;;  %v51_v9 = vadd.f32 %v50_v7, %v49_v6  ;;  %v70_v16 = vsub.s32 %v67_v13, %v69_v14  ;;  %316 = vmatpush3.msk.msra.mxu1 %vm167_vm4, %v155_v23  ;;  %vm163_vm5 = vcmask 15360   ;;  %v303_v29 = vld [vmem:[%s458_s3] ss:$0 sm:$0xff]  ;;  %s383_s1 = smov [#allocation5]  }
  0x13   :  { %v249_v37 = vsub.s32 0, %v69_v14  ;;  %v256_v40 = vsub.s32 1, %v69_v14  ;;  %v382_v42 = vmov 839922192   ;;  %s288_s2 = sshll.u32 %s383_s1, 4  ;;  %s289_s2 = int_to_ptr.vmem [resolvable:$true] %s288_s2 }
  0x14   :  { %47 = vadd.xlane.f32.xlu0 %v46_v8  ;;  %v264_v43 = vunpack.c.l.s4 %v382_v42  ;;  %s353_s3 = scalar_lea.vmem %s289_s2, 256  ;;  %p358_p6 = scmp.lt.s32.totalorder %s289_s2, %s289_s2 }
  0x15   :  { %p354_p5 = scmp.ne.s32.totalorder %s289_s2, %s353_s3  ;;  %p359_p7 = scmp.lt.s32.totalorder %s353_s3, %s353_s3 }
  0x16   :  { %v265_v44 = vunpack.c.0.s8 %v264_v43 }
  0x17   :  { %p360_p8 = por %p359_p7, %p358_p6 }
  0x18   :  { %52 = vadd.xlane.f32.xlu0 %v51_v9  ;;  %v268_v45 = vsub.s32 %v265_v44, %v69_v14 }
  0x19   :  { %p361_p9 = pnand %p360_p8, %p354_p5 }
  0x9d   :  { %v48_v15 = vpop.xlane.xlu0 %47 }
  0x9e   :  { %v54_v17 = vmul.f32 0.00390625, %v48_v15 }
  0xa0   :  { %v71_v20 = vrot.slane %v54_v17, %v70_v16 }
  0xa1   :  { %v53_v18 = vpop.xlane.xlu0 %52 }
  0xa2   :  { %v55_v19 = vmul.f32 0.00390625, %v53_v18 }
  0xa4   :  { %v75_v21 = vrot.slane %v55_v19, %v70_v16 }
  0xa6   :  { %v77_v22 = vsel %vm76_vm2, %v75_v21, %v71_v20 }
  0xa7   :  { %313 = vmatmul.mubr.msk.f32.vlgmr.msra.gmra.mxu0 %vm78_vm3, %v77_v22 }
 0x167   :  { %v150_v25 = vpop.f32.mrf.mxu0 }
 0x168   :  { %v151_v26 = vadd.f32 %v300_v24, %v150_v25 }
 0x169   :  { %v314_v27 = vpop.f32.mrf.mxu0 }
 0x16a   :  { %v154_v28 = vmax.f32 %v151_v26, 0.0 }
 0x16c   :  { %318 = vmatmul.mubr.msk.f32.vlgmr.msra.gmra.mxu1 %vm163_vm5, %v154_v28 }
 0x22c   :  { %v237_v30 = vpop.f32.mrf.mxu1 }
 0x22d   :  { %v238_v31 = vadd.f32 %v303_v29, %v237_v30 }
 0x22e   :  { %v319_v32 = vpop.f32.mrf.mxu1 }
 0x22f   :  { %v241_v33 = vsub.f32 0.0, %v238_v31 }
 0x231   :  { %v242_v34 = vmul.f32 1.442695, %v241_v33 }
 0x233   :  { %329 = vpow2.f32 %v242_v34 }
 0x240   :  { %v330_v35 = vpop.eup %329 }
 0x241   :  { %v244_v36 = vadd.f32 1.0, %v330_v35 }
 0x243   :  { %331 = vrcp.f32 %v244_v36 }
 0x250   :  { %v332_v38 = vpop.eup %331 }
 0x251   :  { %v250_v39 = vrot.slane %v332_v38, %v249_v37  ;;  %v257_v41 = vrot.slane %v332_v38, %v256_v40 }
 0x253   :  { %252 = vbcast.lane.b32.xlu1 %v250_v39, 256 }
 0x257   :  { %259 = vbcast.lane.b32.xlu1 %v257_v41, 256 }
 0x2c5   :  { %v253_v46 = vpop.permute.xlu1 %252 }
 0x2c6   :  { %v269_v47 = vrot.slane %v253_v46, %v268_v45 }
 0x2c8   :  { %v279_v48 = vmul.f32 %v269_v47, %v420_v0 }
 0x2c9   :  { %v260_v49 = vpop.permute.xlu1 %259 }
 0x2ca   :  { %281 = vst [vmem:[#allocation5] sm:$0xff] %v279_v48  ;;  %v276_v50 = vrot.slane %v260_v49, %v268_v45 }
 0x2cc   :  { %v280_v51 = vmul.f32 %v276_v50, %v422_v1 }
 0x2ce   :  { %282 = vst [vmem:[#allocation5 + $0x8] sm:$0xff] %v280_v51 }
 0x2cf   :  { %364 = shalt.err (!%p361_p9)
}
 0x2d0   :  { %294 = dma.vmem_to_hbm [thread:$0]  %s289_s2, 256, %s460_s5, [#allocation4], %s378_s21, %s378_s21, %s379_s22  }
 0x2d1   :  { %375 = dma.done.wait [#allocation4], 256  }
 0x2d2   :  { %376 = vsyncadd [#allocation4], 4294967040 }
 0x2d3   :  { %298 = vsyncpa [#allocation3], 1 }
 0x2d4   :  { %299 = vsyncpa [#allocation4], 1 }

</bundles_post_ra>
